<compile_context>
chip_gen: v5e
topology: v5e:2x2
jax: 0.10.0
libtpu: 0.0.40
codegen_flags: <defaults>
</compile_context>

<pallas_src>
import functools
import math

import numpy as np
import jax
import jax.numpy as jnp
from jax.experimental import pallas as pl
from jax.experimental.pallas import tpu as pltpu


_MAX_PLANES_PER_STEP = 1024   # hard cap on planes folded into one grid step
_MAX_SUBSLABS = 32            # cap on the statically-unrolled height-pass loop


# ----------------------------------------------------------------------------
# dtype helpers
# ----------------------------------------------------------------------------
def _out_dtype(dtype):
    dtype = jnp.dtype(dtype)
    return dtype if jnp.issubdtype(dtype, jnp.floating) else jnp.dtype(jnp.float32)


def _compute_dtype(dtype):
    # bf16 MXU path for sub-32-bit inputs; f32 otherwise (keeps f32 accuracy).
    return (jnp.dtype(jnp.bfloat16)
            if jnp.dtype(dtype).itemsize <= 2 else jnp.dtype(jnp.float32))


def _sublane_multiple(dtype):
    # One sublane tile: 8 rows f32, 16 bf16/f16, 32 int8/uint8.
    return max(8, 32 // jnp.dtype(dtype).itemsize)


def _lcm(a, b):
    return a * b // math.gcd(a, b)


# ----------------------------------------------------------------------------
# Hardware query (safe fallbacks: v7x-sized VMEM, v5e-sized MXU, 1 core).
# ----------------------------------------------------------------------------
@functools.lru_cache(maxsize=None)
def _hw_info():
    vmem = 64 * 1024 * 1024
    mxu = 128
    cores = 1
    try:
        info = pltpu.get_tpu_info()
        vmem = int(getattr(info, "vmem_capacity_bytes", vmem) or vmem)
        cores = int(getattr(info, "num_cores", cores) or cores)
    except Exception:
        pass
    try:
        kind = jax.devices()[0].device_kind.lower()
        if not any(t in kind for t in ("v2", "v3", "v4", "v5")):
            mxu = 256                      # v6e / v7x MXU tile
    except Exception:
        pass
    return vmem, mxu, cores


# ----------------------------------------------------------------------------
# Interpolation matrices (PyTorch bilinear, align_corners=False, no antialias):
#   src = max(0, (dst + 0.5) * (in/out) - 0.5)
#   i0  = floor(src), i1 = min(i0 + 1, in - 1), w1 = src - i0, w0 = 1 - w1
# Built with numpy once per (out, in) and cached on device per compute dtype.
# ----------------------------------------------------------------------------
@functools.lru_cache(maxsize=None)
def _bilinear_matrix_np(out_size, in_size):
    scale = in_size / out_size
    dst = np.arange(out_size, dtype=np.float64)
    src = np.maximum((dst + 0.5) * scale - 0.5, 0.0)
    i0 = np.minimum(np.floor(src).astype(np.int64), in_size - 1)
    i1 = np.minimum(i0 + 1, in_size - 1)
    w1 = src - i0
    w0 = 1.0 - w1
    m = np.zeros((out_size, in_size), dtype=np.float64)
    rows = np.arange(out_size)
    np.add.at(m, (rows, i0), w0)
    np.add.at(m, (rows, i1), w1)
    return m.astype(np.float32)            # (out_size, in_size)


@functools.lru_cache(maxsize=None)
def _device_matrices(h_in, w_in, h_out, w_out, g, cd_name):
    cd = jnp.dtype(cd_name)
    rh = _bilinear_matrix_np(h_out, h_in)
    rh_bd = np.kron(np.eye(g, dtype=np.float32), rh)           # (g*h_out, g*h_in), <= ~MXU tile
    rwt = np.ascontiguousarray(_bilinear_matrix_np(w_out, w_in).T)
    return jnp.asarray(rh_bd, dtype=cd), jnp.asarray(rwt, dtype=cd)


# ----------------------------------------------------------------------------
# Kernel: P planes per grid step, height pass over sub-slabs of g planes.
# ----------------------------------------------------------------------------
def _resize_kernel(x_ref, rhbd_ref, rwt_ref, o_ref, *, g, h_in, h_out, w_first):
    cd = rwt_ref.dtype
    gh_in, gh_out = g * h_in, g * h_out
    n_sub = x_ref.shape[0] // gh_in                    # static, <= _MAX_SUBSLABS
    if w_first:
        # Width pass: one MXU matmul over all P planes; emit compute dtype directly.
        t = jnp.dot(x_ref[...].astype(cd), rwt_ref[...], preferred_element_type=cd)
        for s in range(n_sub):                         # short, statically unrolled
            y = jnp.dot(rhbd_ref[...], t[s * gh_in:(s + 1) * gh_in, :],
                        preferred_element_type=jnp.float32)
            o_ref[pl.ds(s * gh_out, gh_out), :] = y.astype(o_ref.dtype)
    else:
        for s in range(n_sub):
            x_s = x_ref[pl.ds(s * gh_in, gh_in), :].astype(cd)
            t = jnp.dot(rhbd_ref[...], x_s, preferred_element_type=cd)
            y = jnp.dot(t, rwt_ref[...], preferred_element_type=jnp.float32)
            o_ref[pl.ds(s * gh_out, gh_out), :] = y.astype(o_ref.dtype)


# ----------------------------------------------------------------------------
# Jitted end-to-end per-tensor path (reshape -> pallas_call -> reshape).
# ----------------------------------------------------------------------------
@functools.partial(jax.jit, static_argnames=(
    "planes", "g", "h_out", "w_out", "w_first", "vmem_limit"))
def _resize_call(x, rh_bd, rwt, *, planes, g, h_out, w_out, w_first, vmem_limit):
    lead = x.shape[:-2]
    h_in, w_in = int(x.shape[-2]), int(x.shape[-1])
    nplanes = int(np.prod(lead)) if lead else 1
    out_dtype = _out_dtype(x.dtype)

    x_flat = x.reshape((nplanes, h_in, w_in))
    n_pad = pl.cdiv(nplanes, planes) * planes
    pad = n_pad - nplanes
    if pad:
        # TODO(synk): ragged-tail pallas_call instead of pad/slice HBM copies;
        # only reachable when no padding-free plane batch exists for this shape.
        x_flat = jnp.pad(x_flat, ((0, pad), (0, 0), (0, 0)))
    groups = n_pad // planes
    x2d = x_flat.reshape((n_pad * h_in, w_in))          # merge leading dims: free

    kernel = functools.partial(_resize_kernel, g=g, h_in=h_in, h_out=h_out,
                               w_first=w_first)
    y2d = pl.pallas_call(
        kernel,
        out_shape=jax.ShapeDtypeStruct((n_pad * h_out, w_out), out_dtype),
        grid=(groups,),
        in_specs=[
            pl.BlockSpec((planes * h_in, w_in), lambda i: (i, 0)),
            pl.BlockSpec((g * h_out, g * h_in), lambda i: (0, 0)),
            pl.BlockSpec((w_in, w_out), lambda i: (0, 0)),
        ],
        out_specs=pl.BlockSpec((planes * h_out, w_out), lambda i: (i, 0)),
        compiler_params=pltpu.CompilerParams(
            dimension_semantics=("parallel",),
            vmem_limit_bytes=int(vmem_limit),
        ),
    )(x2d, rh_bd, rwt)

    y = y2d.reshape((n_pad, h_out, w_out))
    if pad:
        y = y[:nplanes]
    return y.reshape(lead + (h_out, w_out))


# ----------------------------------------------------------------------------
# Static planning: group size g, plane batch P, matmul order, VMEM sizing.
# ----------------------------------------------------------------------------
def _plan(nplanes, h_in, w_in, h_out, w_out, in_dtype):
    in_dtype = jnp.dtype(in_dtype)
    out_dtype = _out_dtype(in_dtype)
    cd = _compute_dtype(in_dtype)
    in_b, out_b, cd_b = in_dtype.itemsize, out_dtype.itemsize, cd.itemsize
    sub_in = _sublane_multiple(in_dtype)
    sub_out = _sublane_multiple(out_dtype)
    sub_cd = _sublane_multiple(cd)

    vmem_cap, mxu, cores = _hw_info()
    # Per-generation sizing: ~96/60 MiB (v5e/v6e, 128 MiB physical), ~48/28 MiB (v7x).
    vmem_limit = min(96 * 1024 * 1024, (vmem_cap * 3) // 4)
    budget = min(64 * 1024 * 1024, max(8 * 1024 * 1024, vmem_cap // 2 - 4 * 1024 * 1024))

    def align(h, sub):
        return sub // math.gcd(sub, h)

    # Block-diagonal group g: sublane-aligned sub-slab boundaries, height within
    # ~one MXU tile (bounds kron waste), and dividing the plane count if possible.
    g0 = _lcm(align(h_in, sub_cd), align(h_out, sub_out))
    n_round = -(-max(nplanes, 1) // g0) * g0
    g_cap = max(g0, (max(1, mxu // max(h_in, h_out)) // g0) * g0)
    g_cap = min(g_cap, n_round)
    g = g0
    for cand in range(g_cap, g0 - 1, -g0):
        if n_round % cand == 0:
            g = cand
            break

    base = _lcm(g, align(h_in, sub_in))        # plane-batch granularity
    n_pad = -(-max(nplanes, 1) // base) * base
    m = n_pad // base

    def cost(p):
        blocks = 2 * p * (h_in * w_in * in_b + h_out * w_out * out_b)   # double-buffered I/O
        mats = 2 * ((g * h_out) * (g * h_in) + w_in * w_out) * cd_b     # double-buffered matrices
        x_cast = p * h_in * w_in * cd_b if in_dtype != cd else 0        # in-kernel cast copy
        t_buf = p * h_in * max(w_in, w_out) * cd_b                      # intermediate (worst case)
        y_buf = 2 * g * h_out * w_out * 4                               # f32 per-slab result
        return blocks + mats + x_cast + t_buf + y_buf + (1 << 20)       # + 1 MiB slack

    # Single-core chips (v5e/v6e): take the largest fitting batch even if groups == 1.
    # Multi-core chips (v7x): keep enough grid steps for both cores + pipelining.
    desired_groups = 1 if cores < 2 else min(2 * cores, m)
    par_cap = max(base, (n_pad // max(desired_groups, 1) // base) * base)
    cap_planes = min(n_pad, _MAX_PLANES_PER_STEP, par_cap)

    planes = base
    for d in range(1, m + 1):                  # P divides n_pad -> no extra padding
        if m % d:
            continue
        p = d * base
        if p > cap_planes or p // g > _MAX_SUBSLABS or cost(p) > budget:
            continue
        planes = max(planes, p)

    if cost(planes) > budget:
        # Even the minimal batch exceeds the budget (very large planes): raise the
        # scoped-VMEM limit and run anyway.
        # TODO(synk): tile H_out with a 2-D grid for planes larger than physical VMEM.
        vmem_limit = max(vmem_limit, min((vmem_cap * 9) // 10, 112 * 1024 * 1024))

    # Matmul order minimizing MXU FLOPs (per plane, including bounded kron waste).
    cost_w = h_in * w_in * w_out + g * h_out * h_in * w_out
    cost_h = g * h_out * h_in * w_in + h_out * w_in * w_out
    w_first = bool(cost_w <= cost_h)

    return planes, g, cd, w_first, int(vmem_limit)


# ----------------------------------------------------------------------------
# Resize "module": mirrors the PyTorch forward (dict in -> dict out).
# ----------------------------------------------------------------------------
class Resize:
    def __init__(self, size, interpolation="bilinear", max_size=None, antialias=None):
        # TODO(synk): nearest/box/bicubic/lanczos and antialias=True are not implemented.
        assert interpolation == "bilinear"
        assert antialias in (None, False)
        self.size = size
        self.max_size = max_size

    def _output_hw(self, h_in, w_in):
        if isinstance(self.size, (tuple, list)):
            return int(self.size[0]), int(self.size[1])
        s = int(self.size)                       # int size: shorter side -> size
        if h_in <= w_in:
            h_out, w_out = s, int(round(s * w_in / h_in))
        else:
            h_out, w_out = int(round(s * h_in / w_in)), s
        if self.max_size is not None and max(h_out, w_out) > self.max_size:
            scale = self.max_size / max(h_out, w_out)
            h_out, w_out = int(round(h_out * scale)), int(round(w_out * scale))
        return h_out, w_out

    def _resize_one(self, x):
        h_in, w_in = int(x.shape[-2]), int(x.shape[-1])
        h_out, w_out = self._output_hw(h_in, w_in)
        nplanes = int(np.prod(x.shape[:-2])) if x.ndim > 2 else 1
        planes, g, cd, w_first, vmem_limit = _plan(
            nplanes, h_in, w_in, h_out, w_out, x.dtype)
        rh_bd, rwt = _device_matrices(h_in, w_in, h_out, w_out, g, cd.name)
        return _resize_call(x, rh_bd, rwt, planes=planes, g=g,
                            h_out=h_out, w_out=w_out, w_first=w_first,
                            vmem_limit=vmem_limit)

    def __call__(self, data_dict):
        # TODO(synk): tensors sharing (H_in, W_in, dtype) could be merged into one
        # pallas_call to amortize launch overhead further.
        return {k: self._resize_one(v) for k, v in data_dict.items()}


if __name__ == "__main__":
    key = jax.random.PRNGKey(0)
    k1, k2, k3 = jax.random.split(key, 3)
    # NCHW inputs (PyTorch convention); bf16 exercises the low-precision path.
    data = {
        "image": jax.random.normal(k1, (2, 4, 16, 16), dtype=jnp.float32),
        "aux":   jax.random.normal(k2, (2, 4, 12, 20), dtype=jnp.float32),
        "feat":  jax.random.normal(k3, (2, 4, 16, 24),
                                   dtype=jnp.float32).astype(jnp.bfloat16),
    }

    resize = Resize(size=(8, 8), interpolation="bilinear", antialias=None)
    out = resize(data)
    out = jax.tree_util.tree_map(jax.block_until_ready, out)

    # Sanity check against a plain-JAX separable bilinear reference.
    ok = True
    for name, v in data.items():
        h_in, w_in = v.shape[-2], v.shape[-1]
        rh = jnp.asarray(_bilinear_matrix_np(8, h_in))
        rw = jnp.asarray(_bilinear_matrix_np(8, w_in))
        ref = jnp.einsum("oh,nchw,pw->ncop", rh, v.astype(jnp.float32), rw,
                         precision=jax.lax.Precision.HIGHEST)
        got = out[name]
        exp_dtype = v.dtype if jnp.issubdtype(v.dtype, jnp.floating) else jnp.float32
        tol = 6e-2 if jnp.dtype(exp_dtype) == jnp.dtype(jnp.bfloat16) else 2e-2
        ok &= got.shape == v.shape[:-2] + (8, 8)
        ok &= jnp.dtype(got.dtype) == jnp.dtype(exp_dtype)
        ok &= bool(jnp.allclose(got.astype(jnp.float32), ref, atol=tol, rtol=tol))

    print("KERNEL_OK" if ok else "MISMATCH")
</pallas_src>

<mosaic_0001>
module attributes {stable_mosaic.version = 11 : i64} {
  func.func @_resize_kernel(%arg0: i32, %arg1: memref<128x16xf32, #tpu.memory_space<vmem>>, %arg2: memref<64x128xf32, #tpu.memory_space<vmem>>, %arg3: memref<16x8xf32, #tpu.memory_space<vmem>>, %arg4: memref<64x8xf32, #tpu.memory_space<vmem>>) attributes {dimension_semantics = [#tpu.dimension_semantics<parallel>], iteration_bounds = array<i64: 1>, scalar_prefetch = 0 : i64, scratch_operands = 0 : i64, tpu.core_type = #tpu.core_type<tc>, window_params = [{transform_indices = @transform_0, window_bounds = array<i64: 128, 16>}, {pipeline_mode = #tpu.pipeline_mode<synchronous>, transform_indices = @transform_1, window_bounds = array<i64: 64, 128>}, {pipeline_mode = #tpu.pipeline_mode<synchronous>, transform_indices = @transform_2, window_bounds = array<i64: 16, 8>}, {transform_indices = @transform_3, window_bounds = array<i64: 64, 8>}]} {
    %c0 = arith.constant 0 : index
    %c0_0 = arith.constant 0 : index
    %0 = vector.load %arg1[%c0, %c0_0] : memref<128x16xf32, #tpu.memory_space<vmem>>, vector<128x16xf32>
    %c0_1 = arith.constant 0 : index
    %c0_2 = arith.constant 0 : index
    %1 = vector.load %arg3[%c0_1, %c0_2] : memref<16x8xf32, #tpu.memory_space<vmem>>, vector<16x8xf32>
    %cst = arith.constant dense<0.000000e+00> : vector<128x8xf32>
    %2 = tpu.matmul %0, %1, %cst {dimension_numbers = #tpu.dot_dimension_numbers<[1], [0], [0], [1], [0, 0, 1, 1], [], []>} : vector<128x16xf32>, vector<16x8xf32>, vector<128x8xf32> -> vector<128x8xf32>
    %c0_3 = arith.constant 0 : index
    %c0_4 = arith.constant 0 : index
    %3 = vector.load %arg2[%c0_3, %c0_4] : memref<64x128xf32, #tpu.memory_space<vmem>>, vector<64x128xf32>
    %cst_5 = arith.constant dense<0.000000e+00> : vector<64x8xf32>
    %4 = tpu.matmul %3, %2, %cst_5 {dimension_numbers = #tpu.dot_dimension_numbers<[1], [0], [0], [1], [0, 0, 1, 1], [], []>} : vector<64x128xf32>, vector<128x8xf32>, vector<64x8xf32> -> vector<64x8xf32>
    %c0_6 = arith.constant 0 : index
    %c0_7 = arith.constant 0 : index
    %5 = vector.load %arg4[%c0_6, %c0_7] : memref<64x8xf32, #tpu.memory_space<vmem>>, vector<64x8xf32>
    tpu.vector_store %arg4[%c0_6, %c0_7], %4 {strides = array<i32>} : memref<64x8xf32, #tpu.memory_space<vmem>>, vector<64x8xf32>,
    return
  }
  func.func @transform_0(%arg0: i32) -> (i32, i32) {
    %c0_i32 = arith.constant 0 : i32
    %c0_i32_0 = arith.constant 0 : i32
    return %arg0, %c0_i32 : i32, i32
  }
  func.func @transform_1(%arg0: i32) -> (i32, i32) {
    %c0_i32 = arith.constant 0 : i32
    %c0_i32_0 = arith.constant 0 : i32
    %c0_i32_1 = arith.constant 0 : i32
    return %c0_i32, %c0_i32_0 : i32, i32
  }
  func.func @transform_2(%arg0: i32) -> (i32, i32) {
    %c0_i32 = arith.constant 0 : i32
    %c0_i32_0 = arith.constant 0 : i32
    %c0_i32_1 = arith.constant 0 : i32
    return %c0_i32, %c0_i32_0 : i32, i32
  }
  func.func @transform_3(%arg0: i32) -> (i32, i32) {
    %c0_i32 = arith.constant 0 : i32
    %c0_i32_0 = arith.constant 0 : i32
    return %arg0, %c0_i32 : i32, i32
  }
}

</mosaic_0001>

<bundles_post_ra>
// kernel: _resize_call.1
= control target key start
LH: loop header
LB: loop body
LE: loop exit
PB: predicated region body
PF: predicated region fallthrough
CT: control target
= control target key end

     0   :  { %8 = vsyncpa [#allocation3], 0  ;;  %s447_s0 = inlined_call_operand.hbm [shape: f32[128,16], index: 0, kind: input, shape index: {}]   ;;  %s448_s1 = inlined_call_operand.hbm [shape: f32[64,128], index: 1, kind: input, shape index: {}]   ;;  %s449_s2 = inlined_call_operand.vmem [shape: f32[16,8], index: 2, kind: input, shape index: {}]   ;;  %s450_s3 = inlined_call_operand.hbm [shape: f32[64,8], index: 3, kind: output, shape index: {}]  }
   0x1   :  { %9 = vsyncpa [#allocation6], 0 }
   0x2   :  { %10 = vsyncpa [#allocation4], 0  ;;  %s15_s14 = sshll.u32 %s447_s0, 4  ;;  %s374_s15 = smov [#allocation2]   ;;  %s16_s14 = int_to_ptr.hbm [resolvable:$true] %s15_s14 }
   0x3   :  { %s17_s16 = sshll.u32 %s374_s15, 4  ;;  %s28_s19 = sshll.u32 %s448_s1, 4  ;;  %s18_s16 = int_to_ptr.vmem [resolvable:$true] %s17_s16  ;;  %s29_s19 = int_to_ptr.hbm [resolvable:$true] %s28_s19 }
   0x4   :  { %s375_s20 = smov 128   ;;  %s376_s21 = smov 8  }
   0x5   :  { %23 = dma.hbm_to_vmem [thread:$0]  %s16_s14, 2048, %s18_s16, [#allocation3], %s375_s20, %s375_s20, %s376_s21  }
   0x6   :  { %s377_s22 = smov [#allocation5]  }
   0x7   :  { %s30_s23 = sshll.u32 %s377_s22, 4  ;;  %s31_s23 = int_to_ptr.vmem [resolvable:$true] %s30_s23 }
   0x8   :  { %36 = dma.hbm_to_vmem [thread:$0]  %s29_s19, 1024, %s31_s23, [#allocation6], %s375_s20, %s375_s20, %s376_s21  }
   0x9   :  { %368 = dma.done.wait [#allocation3], 2048  }
   0xa   :  { %369 = vsyncadd [#allocation3], 4294965248 }
   0xb   :  { %370 = dma.done.wait [#allocation6], 1024  }
   0xc   :  { %371 = vsyncadd [#allocation6], 4294966272  ;;  %v64_v0 = vld [vmem:[%s449_s2 + $0x8] sm:$0xff]  ;;  %v63_v1 = vld [vmem:[%s449_s2] sm:$0xff]  ;;  %vm65_vm0 = vcmask 130048   ;;  %vm228_vm1 = vcmask 64512  }
   0xd   :  { %273 = vmatpush.msra.mxu2 %v64_v0  ;;  %v54_v2 = vld [vmem:[#allocation2 + $0x38] sm:$0xff]  ;;  %128 = vmatpush.msra.mxu0 %v64_v0  ;;  %v47_v3 = vld [vmem:[#allocation2] sm:$0xff]  ;;  %v48_v5 = vld [vmem:[#allocation2 + $0x8] sm:$0xff]  ;;  %s378_s2 = smov [#allocation7]   ;;  %s243_s29 = sshll.u32 %s450_s3, 4  ;;  %s244_s29 = int_to_ptr.hbm [resolvable:$true] %s243_s29 }
   0xe   :  { %v55_v4 = vld [vmem:[#allocation2 + $0x40] sm:$0xff]  ;;  %v56_v6 = vld [vmem:[#allocation2 + $0x48] sm:$0xff]  ;;  %v49_v7 = vld [vmem:[#allocation2 + $0x10] sm:$0xff]  ;;  %s241_s26 = sshll.u32 %s378_s2, 4  ;;  %s242_s26 = int_to_ptr.vmem [resolvable:$true] %s241_s26 }
   0xf   :  { %274 = vmatpush.msra.mxu2 %v63_v1  ;;  %129 = vmatpush.msra.mxu0 %v63_v1  ;;  %v57_v8 = vld [vmem:[#allocation2 + $0x50] sm:$0xff]  ;;  %v50_v9 = vld [vmem:[#allocation2 + $0x18] sm:$0xff]  ;;  %v51_v11 = vld [vmem:[#allocation2 + $0x20] sm:$0xff] }
  0x10   :  { %264 = vmatmul.msk.f32.vlgmr.msra.gmra.mxu2 %vm65_vm0, %v54_v2  ;;  %257 = vmatmul.msk.f32.vlgmr.msra.gmra.mxu0 %vm65_vm0, %v47_v3  ;;  %v58_v10 = vld [vmem:[#allocation2 + $0x58] sm:$0xff]  ;;  %v59_v12 = vld [vmem:[#allocation2 + $0x60] sm:$0xff]  ;;  %v52_v13 = vld [vmem:[#allocation2 + $0x28] sm:$0xff] }
  0x11   :  { %v60_v14 = vld [vmem:[#allocation2 + $0x68] sm:$0xff]  ;;  %v53_v15 = vld [vmem:[#allocation2 + $0x30] sm:$0xff]  ;;  %v62_v17 = vld [vmem:[#allocation2 + $0x78] sm:$0xff] }
  0x12   :  { %v61_v16 = vld [vmem:[#allocation2 + $0x70] sm:$0xff]  ;;  %v179_v34 = vld [vmem:[#allocation5] sm:$0xff]  ;;  %v184_v35 = vld [vmem:[#allocation5 + $0x28] sm:$0xff] }
  0x13   :  { %v180_v36 = vld [vmem:[#allocation5 + $0x8] sm:$0xff]  ;;  %v185_v37 = vld [vmem:[#allocation5 + $0x30] sm:$0xff]  ;;  %v186_v39 = vld [vmem:[#allocation5 + $0x38] sm:$0xff] }
  0x14   :  { %v181_v38 = vld [vmem:[#allocation5 + $0x10] sm:$0xff]  ;;  %v182_v40 = vld [vmem:[#allocation5 + $0x18] sm:$0xff]  ;;  %v183_v41 = vld [vmem:[#allocation5 + $0x20] sm:$0xff] }
  0x18   :  { %265 = vmatmul.msk.f32.gmra.mxu2 %vm65_vm0, %v55_v4  ;;  %258 = vmatmul.msk.f32.gmra.mxu0 %vm65_vm0, %v48_v5 }
  0x20   :  { %266 = vmatmul.msk.f32.gmra.mxu2 %vm65_vm0, %v56_v6  ;;  %259 = vmatmul.msk.f32.gmra.mxu0 %vm65_vm0, %v49_v7 }
  0x28   :  { %267 = vmatmul.msk.f32.gmra.mxu2 %vm65_vm0, %v57_v8  ;;  %260 = vmatmul.msk.f32.gmra.mxu0 %vm65_vm0, %v50_v9 }
  0x30   :  { %268 = vmatmul.msk.f32.gmra.mxu2 %vm65_vm0, %v58_v10  ;;  %261 = vmatmul.msk.f32.gmra.mxu0 %vm65_vm0, %v51_v11 }
  0x38   :  { %269 = vmatmul.msk.f32.gmra.mxu2 %vm65_vm0, %v59_v12  ;;  %262 = vmatmul.msk.f32.gmra.mxu0 %vm65_vm0, %v52_v13 }
  0x40   :  { %270 = vmatmul.msk.f32.gmra.mxu2 %vm65_vm0, %v60_v14  ;;  %263 = vmatmul.msk.f32.gmra.mxu0 %vm65_vm0, %v53_v15 }
  0x48   :  { %271 = vmatmul.msk.f32.gmra.mxu2 %vm65_vm0, %v61_v16 }
  0x50   :  { %272 = vmatmul.msk.f32.gmra.mxu2 %vm65_vm0, %v62_v17 }
  0x8d   :  { %v131_v21 = vpop.f32.mrf.mxu0 }
  0x93   :  { %v152_v18 = vpop.f32.mrf.mxu2 }
  0x95   :  { %v134_v23 = vpop.f32.mrf.mxu0 }
  0x9b   :  { %v155_v19 = vpop.f32.mrf.mxu2 }
  0x9d   :  { %v137_v26 = vpop.f32.mrf.mxu0 }
  0xa3   :  { %v158_v20 = vpop.f32.mrf.mxu2 }
  0xa5   :  { %v140_v28 = vpop.f32.mrf.mxu0 }
  0xab   :  { %v161_v22 = vpop.f32.mrf.mxu2 }
  0xad   :  { %v143_v30 = vpop.f32.mrf.mxu0 }
  0xb3   :  { %v164_v24 = vpop.f32.mrf.mxu2 }
  0xb5   :  { %v146_v32 = vpop.f32.mrf.mxu0 }
  0xbb   :  { %v167_v25 = vpop.f32.mrf.mxu2 }
  0xbd   :  { %v149_v33 = vpop.f32.mrf.mxu0 }
  0xc3   :  { %v170_v27 = vpop.f32.mrf.mxu2 }
  0xcb   :  { %v173_v29 = vpop.f32.mrf.mxu2 }
  0xd3   :  { %v176_v31 = vpop.f32.mrf.mxu2 }
  0xd4   :  { %187 = vmatpush.msra.mxu1 %v176_v31  ;;  %275 = vmatpush.msra.mxu3 %v176_v31 }
  0xd6   :  { %188 = vmatpush.msra.mxu1 %v173_v29  ;;  %276 = vmatpush.msra.mxu3 %v173_v29 }
  0xd8   :  { %189 = vmatpush.msra.mxu1 %v170_v27  ;;  %277 = vmatpush.msra.mxu3 %v170_v27 }
  0xda   :  { %190 = vmatpush.msra.mxu1 %v167_v25  ;;  %278 = vmatpush.msra.mxu3 %v167_v25 }
  0xdc   :  { %191 = vmatpush.msra.mxu1 %v164_v24  ;;  %279 = vmatpush.msra.mxu3 %v164_v24 }
  0xde   :  { %192 = vmatpush.msra.mxu1 %v161_v22  ;;  %280 = vmatpush.msra.mxu3 %v161_v22 }
  0xe0   :  { %193 = vmatpush.msra.mxu1 %v158_v20  ;;  %281 = vmatpush.msra.mxu3 %v158_v20 }
  0xe2   :  { %194 = vmatpush.msra.mxu1 %v155_v19  ;;  %282 = vmatpush.msra.mxu3 %v155_v19 }
  0xe4   :  { %195 = vmatpush.msra.mxu1 %v152_v18  ;;  %283 = vmatpush.msra.mxu3 %v152_v18 }
  0xe6   :  { %196 = vmatpush.msra.mxu1 %v149_v33  ;;  %284 = vmatpush.msra.mxu3 %v149_v33 }
  0xe8   :  { %197 = vmatpush.msra.mxu1 %v146_v32  ;;  %285 = vmatpush.msra.mxu3 %v146_v32 }
  0xea   :  { %198 = vmatpush.msra.mxu1 %v143_v30  ;;  %286 = vmatpush.msra.mxu3 %v143_v30 }
  0xec   :  { %199 = vmatpush.msra.mxu1 %v140_v28  ;;  %287 = vmatpush.msra.mxu3 %v140_v28 }
  0xee   :  { %200 = vmatpush.msra.mxu1 %v137_v26  ;;  %288 = vmatpush.msra.mxu3 %v137_v26 }
  0xf0   :  { %201 = vmatpush.msra.mxu1 %v134_v23  ;;  %289 = vmatpush.msra.mxu3 %v134_v23 }
  0xf2   :  { %202 = vmatpush.msra.mxu1 %v131_v21  ;;  %290 = vmatpush.msra.mxu3 %v131_v21 }
  0xf3   :  { %203 = vmatmul.f32.vlgmr.msra.gmra.mxu1 %v179_v34  ;;  %218 = vmatmul.f32.vlgmr.msra.gmra.mxu3 %v184_v35 }
  0xfb   :  { %206 = vmatmul.f32.gmra.mxu1 %v180_v36  ;;  %221 = vmatmul.f32.gmra.mxu3 %v185_v37 }
 0x103   :  { %209 = vmatmul.f32.gmra.mxu1 %v181_v38  ;;  %224 = vmatmul.f32.gmra.mxu3 %v186_v39 }
 0x10b   :  { %212 = vmatmul.f32.gmra.mxu1 %v182_v40 }
 0x113   :  { %215 = vmatmul.f32.gmra.mxu1 %v183_v41 }
 0x170   :  { %v204_v42 = vpop.f32.mrf.mxu1 }
 0x171   :  { %229 = vst.msk [vmem:[#allocation7] sm:$0xff] %vm228_vm1, %v204_v42 }
 0x176   :  { %v219_v43 = vpop.f32.mrf.mxu3 }
 0x177   :  { %234 = vst.msk [vmem:[#allocation7 + $0x28] sm:$0xff] %vm228_vm1, %v219_v43 }
 0x178   :  { %v207_v44 = vpop.f32.mrf.mxu1 }
 0x179   :  { %230 = vst.msk [vmem:[#allocation7 + $0x8] sm:$0xff] %vm228_vm1, %v207_v44 }
 0x17e   :  { %v222_v45 = vpop.f32.mrf.mxu3 }
 0x17f   :  { %235 = vst.msk [vmem:[#allocation7 + $0x30] sm:$0xff] %vm228_vm1, %v222_v45 }
 0x180   :  { %v210_v46 = vpop.f32.mrf.mxu1 }
 0x181   :  { %231 = vst.msk [vmem:[#allocation7 + $0x10] sm:$0xff] %vm228_vm1, %v210_v46 }
 0x186   :  { %v225_v47 = vpop.f32.mrf.mxu3 }
 0x187   :  { %236 = vst.msk [vmem:[#allocation7 + $0x38] sm:$0xff] %vm228_vm1, %v225_v47 }
 0x188   :  { %v213_v48 = vpop.f32.mrf.mxu1 }
 0x189   :  { %232 = vst.msk [vmem:[#allocation7 + $0x18] sm:$0xff] %vm228_vm1, %v213_v48 }
 0x190   :  { %v216_v49 = vpop.f32.mrf.mxu1 }
 0x191   :  { %233 = vst.msk [vmem:[#allocation7 + $0x20] sm:$0xff] %vm228_vm1, %v216_v49 }
 0x192   :  { %249 = dma.vmem_to_hbm [thread:$0]  %s242_s26, 1024, %s244_s29, [#allocation4], %s375_s20, %s375_s20, %s376_s21  }
 0x193   :  { %372 = dma.done.wait [#allocation4], 1024  }
 0x194   :  { %373 = vsyncadd [#allocation4], 4294966272 }
 0x195   :  { %254 = vsyncpa [#allocation3], 1 }
 0x196   :  { %255 = vsyncpa [#allocation6], 1 }
 0x197   :  { %256 = vsyncpa [#allocation4], 1 }

</bundles_post_ra>
